<compile_context>
chip_gen: v5e
topology: v5e:2x2
jax: 0.10.0
libtpu: 0.0.40
codegen_flags: <defaults>
</compile_context>

<pallas_src>
import functools

import jax
import jax.numpy as jnp
from jax.experimental import pallas as pl
from jax.experimental.pallas import tpu as pltpu


_LANE = 128
_NDF = 64            # PixelDiscriminator ndf
_C2 = 2 * _NDF       # channels after conv2 (128)


def _round_up(x, m):
    return -(-x // m) * m


def _cdiv(a, b):
    return -(-a // b)


def _vmem_capacity_bytes():
    """Best-effort physical VMEM query; conservative (v7x) fallback."""
    try:
        info = pltpu.get_tpu_info()
        for name in ("vmem_capacity_bytes", "vmem_bytes", "vmem_size_bytes"):
            v = getattr(info, name, None)
            if v:
                return int(v)
    except Exception:
        pass
    return 64 << 20


_VMEM_CAP = _vmem_capacity_bytes()
# ~96 MiB scoped limit on v5e/v6e (128 MiB physical), ~48 MiB on v7x (64 MiB).
_VMEM_LIMIT = int(min(_VMEM_CAP * 3 // 4, 100 << 20))
_BIG_VMEM = _VMEM_LIMIT >= (64 << 20)
_PIX_TILE = 16384 if _BIG_VMEM else 8192        # pixels per discriminator grid step
_L1_BLOCK_ROWS = 2048 if _BIG_VMEM else 1024    # (rows, 128) per L1 grid step


def _const_spec(shape):
    nd = len(shape)
    return pl.BlockSpec(shape, lambda *_: (0,) * nd)


# ----------------------------------------------------------------------------
# Kernels
# ----------------------------------------------------------------------------

def _l1_sum_kernel(a_ref, b_ref, o_ref, acc_ref, *, denorm_b, valid_rows,
                   block_rows, blocks_per_part, masked):
    """Accumulate sum |a - d(b)| over this core's blocks.  d(b)=(b+1)/2 if denorm_b."""
    i = pl.program_id(1)

    @pl.when(i == 0)
    def _():
        acc_ref[...] = jnp.zeros_like(acc_ref)

    a = a_ref[...].astype(jnp.float32)
    b = b_ref[...].astype(jnp.float32)
    if denorm_b:
        b = (b + 1.0) * 0.5                      # fused denorm_img of the ground truth
    d = jnp.abs(a - b)
    if masked:
        # Last block may be a partial edge block: drop rows past valid_rows
        # (jnp.where so garbage/NaN lanes cannot poison the sum).
        row0 = (pl.program_id(0) * blocks_per_part + i) * block_rows
        ridx = row0 + jax.lax.broadcasted_iota(jnp.int32, d.shape, 0)
        d = jnp.where(ridx < valid_rows, d, 0.0)
    acc_ref[...] += jnp.sum(d, axis=0, keepdims=True)

    @pl.when(i == pl.num_programs(1) - 1)
    def _():
        o_ref[...] = jnp.sum(acc_ref[...], keepdims=True).reshape(1, 1, 1)


def _disc_stats_kernel(x_ref, w1t_ref, b1_ref, w2t_ref, ones_ref,
                       sum_ref, sq_ref, acc_s, acc_q,
                       *, hw, tile, tiles_per_part, denorm, masked):
    """Pass 1: per-channel sum / sum-of-squares of h2 (training-mode BN stats).

    x block: (1, 3, T) channel-major, pixels on lanes.
    """
    i = pl.program_id(1)
    j = pl.program_id(2)
    first = (i == 0) & (j == 0)
    last = (i == pl.num_programs(1) - 1) & (j == pl.num_programs(2) - 1)

    @pl.when(first)
    def _():
        acc_s[...] = jnp.zeros_like(acc_s)
        acc_q[...] = jnp.zeros_like(acc_q)

    x = x_ref[0].astype(jnp.float32)                        # (3, T)
    if denorm:
        x = (x + 1.0) * 0.5                                 # fused denorm_img
    # conv1 (1x1, 3->64) + bias + LeakyReLU(0.2) as max(h, 0.2h)
    h1 = jnp.dot(w1t_ref[...], x, preferred_element_type=jnp.float32)
    h1 = h1 + b1_ref[...]
    h1 = jnp.maximum(h1, 0.2 * h1)
    if masked:
        # Mask pixel padding on h1 (64 rows); conv2 has no bias, so padded
        # pixel columns of h2 become exactly zero.
        col0 = (pl.program_id(0) * tiles_per_part + j) * tile
        idx = col0 + jax.lax.broadcasted_iota(jnp.int32, (1, tile), 1)
        h1 = jnp.where(idx < hw, h1, 0.0)
    # conv2 (1x1, 64->128, no bias) — bf16 on the MXU, f32 accumulation
    h2 = jnp.dot(w2t_ref[...], h1.astype(jnp.bfloat16),
                 preferred_element_type=jnp.float32)        # (128, T)
    # Per-channel sum / sum-sq as MXU matmuls against a resident ones column
    # (keeps the reductions off the binding VALU/XLU slots).
    ones = ones_ref[...]                                    # (T, 1)
    acc_s[...] += jnp.dot(h2, ones, preferred_element_type=jnp.float32)
    acc_q[...] += jnp.dot(h2 * h2, ones, preferred_element_type=jnp.float32)

    @pl.when(last)
    def _():
        sum_ref[...] = acc_s[...].reshape(1, _C2, 1)
        sq_ref[...] = acc_q[...].reshape(1, _C2, 1)


def _disc_bce_kernel(x_ref, w1t_ref, b1_ref, w2ts_ref, shift_ref, w3t_ref,
                     real_ref, fake_ref, acc_r, acc_f,
                     *, hw, tile, tiles_per_part, denorm, masked):
    """Pass 2: conv1, conv2 (BN scale folded into weights), shift, LeakyReLU,
    conv3 on the MXU, and BCE-with-logits sums against targets 1.0 and 0.0.
    Logits never leave VMEM."""
    i = pl.program_id(1)
    j = pl.program_id(2)
    first = (i == 0) & (j == 0)
    last = (i == pl.num_programs(1) - 1) & (j == pl.num_programs(2) - 1)

    @pl.when(first)
    def _():
        acc_r[...] = jnp.zeros_like(acc_r)
        acc_f[...] = jnp.zeros_like(acc_f)

    x = x_ref[0].astype(jnp.float32)                        # (3, T)
    if denorm:
        x = (x + 1.0) * 0.5
    h1 = jnp.dot(w1t_ref[...], x, preferred_element_type=jnp.float32)
    h1 = h1 + b1_ref[...]
    h1 = jnp.maximum(h1, 0.2 * h1)
    # conv2 with BN scale pre-folded into the weights; add the BN shift.
    h2 = jnp.dot(w2ts_ref[...], h1.astype(jnp.bfloat16),
                 preferred_element_type=jnp.float32)        # (128, T)
    h2 = h2 + shift_ref[...]
    h2 = jnp.maximum(h2, 0.2 * h2)
    # conv3 (1x1, 128->1, no bias) on the MXU: (1,128)@(128,T)
    logit = jnp.dot(w3t_ref[...], h2, preferred_element_type=jnp.float32)  # (1, T)

    # BCEWithLogits:  max(x,0) - x*t + log1p(exp(-|x|))
    base = jnp.maximum(logit, 0.0) + jnp.log1p(jnp.exp(-jnp.abs(logit)))
    bce1 = base - logit                                     # target = 1.0
    bce0 = base                                             # target = 0.0
    if masked:
        col0 = (pl.program_id(0) * tiles_per_part + j) * tile
        idx = col0 + jax.lax.broadcasted_iota(jnp.int32, (1, tile), 1)
        m = idx < hw
        bce1 = jnp.where(m, bce1, 0.0)
        bce0 = jnp.where(m, bce0, 0.0)
    acc_r[...] += bce1
    acc_f[...] += bce0

    @pl.when(last)
    def _():
        real_ref[...] = jnp.sum(acc_r[...], keepdims=True).reshape(1, 1, 1)
        fake_ref[...] = jnp.sum(acc_f[...], keepdims=True).reshape(1, 1, 1)


# ----------------------------------------------------------------------------
# Wrappers
# ----------------------------------------------------------------------------

def l1_loss_mean(a, b, *, denorm_b=False):
    """F.l1_loss(a, denorm(b) if denorm_b else b), mean reduction."""
    n = a.size
    af = a.reshape(-1)
    bf = b.reshape(-1)
    if n % _LANE != 0:
        # Rare fallback: pad flat arrays to a lane multiple (pads contribute 0:
        # a padded with 0; b padded with -1 when denorm is fused, (-1+1)/2 = 0).
        pad = _round_up(n, _LANE) - n
        af = jnp.pad(af.astype(jnp.float32), (0, pad))
        bf = jnp.pad(bf.astype(jnp.float32), (0, pad),
                     constant_values=-1.0 if denorm_b else 0.0)
    rows = af.size // _LANE
    a2 = af.reshape(rows, _LANE)
    b2 = bf.reshape(rows, _LANE)

    if rows <= _L1_BLOCK_ROWS:
        block_rows, nblocks = rows, 1           # single full-extent block
    else:
        block_rows = _L1_BLOCK_ROWS
        nblocks = _cdiv(rows, block_rows)
    masked = (nblocks * block_rows) != rows
    nc = 2 if (nblocks >= 2 and nblocks % 2 == 0) else 1   # v7x: 2 TensorCores
    bpp = nblocks // nc

    kern = functools.partial(
        _l1_sum_kernel, denorm_b=denorm_b, valid_rows=rows,
        block_rows=block_rows, blocks_per_part=bpp, masked=masked)

    partials = pl.pallas_call(
        kern,
        out_shape=jax.ShapeDtypeStruct((nc, 1, 1), jnp.float32),
        grid=(nc, bpp),
        in_specs=[pl.BlockSpec((block_rows, _LANE), lambda c, i: (c * bpp + i, 0)),
                  pl.BlockSpec((block_rows, _LANE), lambda c, i: (c * bpp + i, 0))],
        out_specs=pl.BlockSpec((1, 1, 1), lambda c, i: (c, 0, 0)),
        scratch_shapes=[pltpu.VMEM((1, _LANE), jnp.float32)],
        compiler_params=pltpu.CompilerParams(
            dimension_semantics=("parallel", "arbitrary"),
            vmem_limit_bytes=_VMEM_LIMIT),
    )(a2, b2)
    return jnp.sum(partials) / n


class TrainerPallas:
    """Forward-pass portion of Trainer: netD + GAN/L1/CYC losses."""

    def __init__(self, args, key):
        self.args = args
        k1, k2, k3 = jax.random.split(key, 3)
        # Channel-major weights: h = W^T @ x keeps pixels on lanes (lane-dense).
        # Deterministic synthetic init (PyTorch default affine BN: gamma=1, beta=0).
        self.w1t = 0.1 * jax.random.normal(k1, (_NDF, 3), jnp.float32)        # (64, 3)
        self.b1 = jnp.zeros((_NDF, 1), jnp.float32)
        self.w2t = (0.05 * jax.random.normal(k2, (_C2, _NDF), jnp.float32)
                    ).astype(jnp.bfloat16)                                    # (128, 64)
        self.gamma = jnp.ones((_C2, 1), jnp.float32)
        self.beta = jnp.zeros((_C2, 1), jnp.float32)
        self.w3t = 0.05 * jax.random.normal(k3, (1, _C2), jnp.float32)        # (1, 128)

    def _disc_bce_sums(self, img, *, denorm):
        """PixelDiscriminator + BCEWithLogits, fused.

        img: NCHW (N, 3, H, W).  Returns (sum_bce_target1, sum_bce_target0,
        count) over the N*H*W single-channel logits.  `denorm` fuses
        denorm_img ((x+1)/2) into the input read.  No host-side pad/copy.
        """
        n, chans, h, w = img.shape
        hw = h * w
        x = img.reshape(n, chans, hw)            # NCHW -> (N,C,HW): pure reshape

        t = _PIX_TILE if hw > _PIX_TILE else hw  # full-extent block when it fits
        n_tiles = _cdiv(hw, t)
        masked = (n_tiles * t) != hw             # ragged tail handled in-kernel
        nc = 2 if (n_tiles >= 2 and n_tiles % 2 == 0) else 1   # v7x dual TC
        tpp = n_tiles // nc
        grid = (nc, n, tpp)

        ones = jnp.ones((t, 1), jnp.float32)     # MXU reduction column (resident)

        x_spec = pl.BlockSpec((1, chans, t), lambda c, i, j: (i, 0, c * tpp + j))
        cparams = pltpu.CompilerParams(
            dimension_semantics=("parallel", "arbitrary", "arbitrary"),
            vmem_limit_bytes=_VMEM_LIMIT)
        statics = dict(hw=hw, tile=t, tiles_per_part=tpp, denorm=denorm, masked=masked)

        # Pass 1: batch statistics of h2 (per-channel sum / sum-of-squares).
        s_p, q_p = pl.pallas_call(
            functools.partial(_disc_stats_kernel, **statics),
            out_shape=(jax.ShapeDtypeStruct((nc, _C2, 1), jnp.float32),
                       jax.ShapeDtypeStruct((nc, _C2, 1), jnp.float32)),
            grid=grid,
            in_specs=[x_spec,
                      _const_spec((_NDF, chans)), _const_spec((_NDF, 1)),
                      _const_spec((_C2, _NDF)), _const_spec((t, 1))],
            out_specs=(pl.BlockSpec((1, _C2, 1), lambda c, i, j: (c, 0, 0)),
                       pl.BlockSpec((1, _C2, 1), lambda c, i, j: (c, 0, 0))),
            scratch_shapes=[pltpu.VMEM((_C2, 1), jnp.float32),
                            pltpu.VMEM((_C2, 1), jnp.float32)],
            compiler_params=cparams,
        )(x, self.w1t, self.b1, self.w2t, ones)

        s = jnp.sum(s_p, axis=0)                 # combine per-core partials (XLA)
        sq = jnp.sum(q_p, axis=0)
        cnt = n * hw
        mean = s / cnt
        # Biased variance (PyTorch BN training).  Clamp: E[x^2]-mu^2 can go
        # slightly negative from cancellation.
        var = jnp.maximum(sq / cnt - mean * mean, 0.0)
        invstd = jax.lax.rsqrt(var + 1e-5)
        scale = self.gamma * invstd              # (C2, 1)
        shift = self.beta - mean * scale
        # Fold BN scale into conv2 weights (conv2 is linear, scale is per
        # output channel); the LeakyReLU forbids folding anything into conv3.
        w2ts = (self.w2t.astype(jnp.float32) * scale).astype(jnp.bfloat16)

        # Pass 2: conv stack + folded BN + conv3 (MXU) + fused BCE sums.
        r_p, f_p = pl.pallas_call(
            functools.partial(_disc_bce_kernel, **statics),
            out_shape=(jax.ShapeDtypeStruct((nc, 1, 1), jnp.float32),
                       jax.ShapeDtypeStruct((nc, 1, 1), jnp.float32)),
            grid=grid,
            in_specs=[x_spec,
                      _const_spec((_NDF, chans)), _const_spec((_NDF, 1)),
                      _const_spec((_C2, _NDF)), _const_spec((_C2, 1)),
                      _const_spec((1, _C2))],
            out_specs=(pl.BlockSpec((1, 1, 1), lambda c, i, j: (c, 0, 0)),
                       pl.BlockSpec((1, 1, 1), lambda c, i, j: (c, 0, 0))),
            scratch_shapes=[pltpu.VMEM((1, t), jnp.float32),
                            pltpu.VMEM((1, t), jnp.float32)],
            compiler_params=cparams,
        )(x, self.w1t, self.b1, w2ts, shift, self.w3t)

        return jnp.sum(r_p), jnp.sum(f_p), cnt

    def forward_and_losses(self, img_A, img_T, mask_A, mask_T, netG_outputs):
        # TODO(synk): Blender (netG) architecture is defined in an external file
        # that is not provided; its four outputs are supplied as stand-ins.
        img_pred, img_references, cyc_pair, cyc_pair_cro = netG_outputs
        del img_A, mask_A, mask_T, img_references   # consumed only by netG / viz

        a = self.args
        losses = {}
        total = jnp.float32(0.0)

        if a["lambda_L1"] != 0:
            # F.l1_loss(img_pred, denorm_img(img_T)) — denorm fused into kernel.
            losses["loss_L1"] = l1_loss_mean(img_pred, img_T, denorm_b=True)
            total = total + a["lambda_L1"] * losses["loss_L1"]

        # lambda_VGG path: PerceptualLoss is external -> must be 0 here.

        need_d_pred = (a["lambda_GAN"] != 0) or (a["lambda_DIS"] != 0)
        if need_d_pred:
            # netD(img_pred) computed ONCE; BCE against both targets in one pass
            # (identical forward values for the G loss and the D fake loss).
            bce1_pred, bce0_pred, cnt_pred = self._disc_bce_sums(
                img_pred, denorm=False)

        if a["lambda_GAN"] != 0:
            losses["loss_GAN_G"] = bce1_pred / cnt_pred
            total = total + a["lambda_GAN"] * losses["loss_GAN_G"]

        if a["lambda_CYC"] != 0:
            A, B = cyc_pair
            losses["loss_CYC"] = l1_loss_mean(A, B)
            total = total + a["lambda_CYC"] * losses["loss_CYC"]

        if a["lambda_CYC2"] != 0:
            A, B = cyc_pair_cro
            losses["loss_CYC2"] = l1_loss_mean(A, B)
            total = total + a["lambda_CYC2"] * losses["loss_CYC2"]

        if a["lambda_DIS"] != 0:
            # netD(denorm_img(img_T)) — denorm fused into the discriminator.
            # As in the reference backward_D, loss_GAN_D is scaled by lambda_DIS
            # and is NOT part of total_loss (separate D optimizer).
            bce1_gt, _, cnt_gt = self._disc_bce_sums(img_T, denorm=True)
            d_fake = bce0_pred / cnt_pred
            d_real = bce1_gt / cnt_gt
            losses["loss_GAN_D"] = (d_fake + d_real) * 0.5 * a["lambda_DIS"]

        losses["total_loss"] = total
        return losses


if __name__ == "__main__":
    key = jax.random.PRNGKey(0)
    ks = jax.random.split(key, 10)

    N, C, H, W = 2, 3, 16, 16
    img_A = jax.random.uniform(ks[0], (N, C, H, W), jnp.float32, -1.0, 1.0)
    img_T = jax.random.uniform(ks[1], (N, C, H, W), jnp.float32, -1.0, 1.0)
    mask_A = (jax.random.uniform(ks[2], (N, 1, H, W)) > 0.5).astype(jnp.float32)
    mask_T = (jax.random.uniform(ks[3], (N, 1, H, W)) > 0.5).astype(jnp.float32)

    # Stand-ins for the four Blender (netG) outputs.
    img_pred = jax.random.uniform(ks[4], (N, C, H, W), jnp.float32, 0.0, 1.0)
    img_references = jax.random.uniform(ks[5], (N, C, H, W), jnp.float32)
    cyc_pair = (jax.random.normal(ks[6], (N, C, H, W), jnp.float32),
                jax.random.normal(ks[7], (N, C, H, W), jnp.float32))
    cyc_pair_cro = (jax.random.normal(ks[8], (N, C, H, W), jnp.float32),
                    jax.random.normal(ks[9], (N, C, H, W), jnp.float32))

    args = dict(lambda_L1=1.0, lambda_VGG=0.0, lambda_GAN=0.1,
                lambda_DIS=1.0, lambda_CYC=1.0, lambda_CYC2=1.0)

    trainer = TrainerPallas(args, jax.random.PRNGKey(42))
    losses = trainer.forward_and_losses(
        img_A, img_T, mask_A, mask_T,
        (img_pred, img_references, cyc_pair, cyc_pair_cro))

    jax.block_until_ready(losses["total_loss"])
    assert all(bool(jnp.isfinite(v)) for v in losses.values())
    print("KERNEL_OK")
</pallas_src>

<mosaic_0001>
module attributes {stable_mosaic.version = 11 : i64} {
  func.func @_l1_sum_kernel(%arg0: i32, %arg1: i32, %arg2: memref<12x128xf32, #tpu.memory_space<vmem>>, %arg3: memref<12x128xf32, #tpu.memory_space<vmem>>, %arg4: memref<1x1x1xf32, #tpu.memory_space<vmem>>, %arg5: memref<1x128xf32, #tpu.memory_space<vmem>>) attributes {dimension_semantics = [#tpu.dimension_semantics<parallel>, #tpu.dimension_semantics<arbitrary>], iteration_bounds = array<i64: 1, 1>, scalar_prefetch = 0 : i64, scratch_operands = 1 : i64, tpu.core_type = #tpu.core_type<tc>, window_params = [{transform_indices = @transform_0, window_bounds = array<i64: 12, 128>}, {transform_indices = @transform_1, window_bounds = array<i64: 12, 128>}, {transform_indices = @transform_2, window_bounds = array<i64: 1, 1, 1>}]} {
    %c0_i32 = arith.constant 0 : i32
    %0 = arith.cmpi eq, %arg1, %c0_i32 : i32
    %1 = arith.extui %0 : i1 to i32
    %c0_i32_0 = arith.constant 0 : i32
    %2 = arith.cmpi ne, %1, %c0_i32_0 : i32
    scf.if %2 {
      %cst_12 = arith.constant 0.000000e+00 : f32
      %19 = vector.broadcast %cst_12 : f32 to vector<1x128xf32>
      %c0_13 = arith.constant 0 : index
      %c0_14 = arith.constant 0 : index
      %20 = vector.load %arg5[%c0_13, %c0_14] : memref<1x128xf32, #tpu.memory_space<vmem>>, vector<1x128xf32>
      tpu.vector_store %arg5[%c0_13, %c0_14], %19 {strides = array<i32>} : memref<1x128xf32, #tpu.memory_space<vmem>>, vector<1x128xf32>,
    } else {
    }
    %c0 = arith.constant 0 : index
    %c0_1 = arith.constant 0 : index
    %3 = vector.load %arg2[%c0, %c0_1] : memref<12x128xf32, #tpu.memory_space<vmem>>, vector<12x128xf32>
    %c0_2 = arith.constant 0 : index
    %c0_3 = arith.constant 0 : index
    %4 = vector.load %arg3[%c0_2, %c0_3] : memref<12x128xf32, #tpu.memory_space<vmem>>, vector<12x128xf32>
    %cst = arith.constant 1.000000e+00 : f32
    %5 = vector.broadcast %cst : f32 to vector<12x128xf32>
    %6 = arith.addf %4, %5 : vector<12x128xf32>
    %cst_4 = arith.constant 5.000000e-01 : f32
    %7 = vector.broadcast %cst_4 : f32 to vector<12x128xf32>
    %8 = arith.mulf %6, %7 : vector<12x128xf32>
    %9 = arith.subf %3, %8 : vector<12x128xf32>
    %10 = math.absf %9 : vector<12x128xf32>
    %c0_5 = arith.constant 0 : index
    %c0_6 = arith.constant 0 : index
    %11 = vector.load %arg5[%c0_5, %c0_6] : memref<1x128xf32, #tpu.memory_space<vmem>>, vector<1x128xf32>
    %cst_7 = arith.constant dense<0.000000e+00> : vector<128xf32>
    %12 = vector.multi_reduction <add>, %10, %cst_7 [0] : vector<12x128xf32> to vector<128xf32>
    %13 = vector.shape_cast %12 : vector<128xf32> to vector<1x128xf32>
    %14 = arith.addf %11, %13 : vector<1x128xf32>
    %c0_8 = arith.constant 0 : index
    %c0_9 = arith.constant 0 : index
    %15 = vector.load %arg5[%c0_8, %c0_9] : memref<1x128xf32, #tpu.memory_space<vmem>>, vector<1x128xf32>
    tpu.vector_store %arg5[%c0_8, %c0_9], %14 {strides = array<i32>} : memref<1x128xf32, #tpu.memory_space<vmem>>, vector<1x128xf32>,
    %c0_i32_10 = arith.constant 0 : i32
    %16 = arith.cmpi eq, %arg1, %c0_i32_10 : i32
    %17 = arith.extui %16 : i1 to i32
    %c0_i32_11 = arith.constant 0 : i32
    %18 = arith.cmpi ne, %17, %c0_i32_11 : i32
    scf.if %18 {
      %c0_12 = arith.constant 0 : index
      %c0_13 = arith.constant 0 : index
      %19 = vector.load %arg5[%c0_12, %c0_13] : memref<1x128xf32, #tpu.memory_space<vmem>>, vector<1x128xf32>
      %20 = vector.shape_cast %19 : vector<1x128xf32> to vector<1x1x128xf32>
      %cst_14 = arith.constant dense<0.000000e+00> : vector<1xf32>
      %21 = vector.multi_reduction <add>, %20, %cst_14 [1, 2] : vector<1x1x128xf32> to vector<1xf32>
      %22 = vector.shape_cast %21 : vector<1xf32> to vector<1x1x1xf32>
      %23 = vector.extract %22[0, 0, 0] : f32 from vector<1x1x1xf32>
      %24 = vector.broadcast %23 : f32 to vector<1x1xf32>
      %25 = vector.shape_cast %24 : vector<1x1xf32> to vector<1x1x1xf32>
      %c0_15 = arith.constant 0 : index
      %c0_16 = arith.constant 0 : index
      %c0_17 = arith.constant 0 : index
      %26 = vector.load %arg4[%c0_15, %c0_16, %c0_17] : memref<1x1x1xf32, #tpu.memory_space<vmem>>, vector<1x1x1xf32>
      tpu.vector_store %arg4[%c0_15, %c0_16, %c0_17], %25 {strides = array<i32>} : memref<1x1x1xf32, #tpu.memory_space<vmem>>, vector<1x1x1xf32>,
    } else {
    }
    return
  }
  func.func @transform_0(%arg0: i32, %arg1: i32) -> (i32, i32) {
    %c1_i32 = arith.constant 1 : i32
    %0 = arith.muli %arg0, %c1_i32 : i32
    %1 = arith.addi %0, %arg1 : i32
    %c0_i32 = arith.constant 0 : i32
    %c0_i32_0 = arith.constant 0 : i32
    return %1, %c0_i32 : i32, i32
  }
  func.func @transform_1(%arg0: i32, %arg1: i32) -> (i32, i32) {
    %c1_i32 = arith.constant 1 : i32
    %0 = arith.muli %arg0, %c1_i32 : i32
    %1 = arith.addi %0, %arg1 : i32
    %c0_i32 = arith.constant 0 : i32
    %c0_i32_0 = arith.constant 0 : i32
    return %1, %c0_i32 : i32, i32
  }
  func.func @transform_2(%arg0: i32, %arg1: i32) -> (i32, i32, i32) {
    %c0_i32 = arith.constant 0 : i32
    %c0_i32_0 = arith.constant 0 : i32
    %c0_i32_1 = arith.constant 0 : i32
    return %arg0, %c0_i32, %c0_i32_0 : i32, i32, i32
  }
}

</mosaic_0001>

<bundles_post_ra>
// kernel: tpu_custom_call.1
= control target key start
LH: loop header
LB: loop body
LE: loop exit
PB: predicated region body
PF: predicated region fallthrough
CT: control target
= control target key end

     0   :  { %7 = vsyncpa [#allocation4], 0  ;;  %s237_s0 = inlined_call_operand.hbm [shape: f32[12,128], index: 0, kind: input, shape index: {}]   ;;  %s238_s1 = inlined_call_operand.hbm [shape: f32[12,128], index: 1, kind: input, shape index: {}]   ;;  %s239_s2 = inlined_call_operand.hbm [shape: f32[1,1,1], index: 2, kind: output, shape index: {}]  }
   0x1   :  { %8 = vsyncpa [#allocation7], 0 }
   0x2   :  { %9 = vsyncpa [#allocation5], 0  ;;  %s18_s11 = sshll.u32 %s237_s0, 4  ;;  %s207_s12 = smov [#allocation3]   ;;  %s19_s11 = int_to_ptr.hbm [resolvable:$true] %s18_s11 }
   0x3   :  { %s20_s13 = sshll.u32 %s207_s12, 4  ;;  %s35_s16 = sshll.u32 %s238_s1, 4  ;;  %s21_s13 = int_to_ptr.vmem [resolvable:$true] %s20_s13  ;;  %s36_s16 = int_to_ptr.hbm [resolvable:$true] %s35_s16 }
   0x4   :  { %s208_s17 = smov 128   ;;  %s209_s18 = smov 8  }
   0x5   :  { %26 = dma.hbm_to_vmem [thread:$0]  %s19_s11, 256, %s21_s13, [#allocation4], %s208_s17, %s208_s17, %s209_s18  }
   0x6   :  { %s210_s19 = smov [#allocation6]  }
   0x7   :  { %s37_s20 = sshll.u32 %s210_s19, 4  ;;  %s38_s20 = int_to_ptr.vmem [resolvable:$true] %s37_s20 }
   0x8   :  { %43 = dma.hbm_to_vmem [thread:$0]  %s36_s16, 256, %s38_s20, [#allocation7], %s208_s17, %s208_s17, %s209_s18  }
   0x9   :  { %201 = dma.done.wait [#allocation4], 256  }
   0xa   :  { %202 = vsyncadd [#allocation4], 4294967040 }
   0xb   :  { %203 = dma.done.wait [#allocation7], 256  }
   0xc   :  { %204 = vsyncadd [#allocation7], 4294967040  ;;  %v211_v0 = vmov 0.0   ;;  %v63_v1 = vld [vmem:[#allocation6] sm:$0xff]  ;;  %v64_v2 = vld [vmem:[#allocation6 + $0x8] sm:$0xf] }
   0xd   :  { %60 = vst [vmem:[#allocation2] sm:$0x1] %v211_v0  ;;  %v65_v3 = vadd.f32 1.0, %v63_v1  ;;  %v61_v4 = vld [vmem:[#allocation3] sm:$0xff]  ;;  %v66_v5 = vadd.f32 1.0, %v64_v2  ;;  %vm74_vm0 = vcmask 1043456  }
   0xe   :  { %v62_v6 = vld [vmem:[#allocation3 + $0x8] sm:$0xf]  ;;  %vm89_vm1 = vcmask 1040384   ;;  %s212_s0 = smov [#allocation8]   ;;  %s110_s23 = sshll.u32 %s239_s2, 4  ;;  %vm101_vm2 = vcmask 0   ;;  %s111_s23 = int_to_ptr.hbm [resolvable:$true] %s110_s23 }
   0xf   :  { %v67_v7 = vmul.f32 0.5, %v65_v3  ;;  %v68_v8 = vmul.f32 0.5, %v66_v5  ;;  %s108_s1 = sshll.u32 %s212_s0, 4  ;;  %s109_s1 = int_to_ptr.vmem [resolvable:$true] %s108_s1 }
  0x11   :  { %v69_v9 = vsub.f32 %v61_v4, %v67_v7  ;;  %v70_v10 = vsub.f32 %v62_v6, %v68_v8 }
  0x13   :  { %v71_v11 = vand.u32 2147483647, %v69_v9  ;;  %v72_v12 = vand.u32 2147483647, %v70_v10 }
  0x14   :  { %v73_v20 = vld [vmem:[#allocation2] sm:$0x1] }
  0x15   :  { %v75_v13 = vsel %vm74_vm0, %v72_v12, 0.0 }
  0x16   :  { %v76_v14 = vadd.f32 %v75_v13, %v71_v11 }
  0x18   :  { %v77_v15 = vrot.slane %v76_v14, 4 }
  0x1a   :  { %v78_v16 = vadd.f32 %v77_v15, %v76_v14 }
  0x1c   :  { %v79_v17 = vrot.slane %v78_v16, 2 }
  0x1e   :  { %v80_v18 = vadd.f32 %v79_v17, %v78_v16 }
  0x20   :  { %v81_v19 = vrot.slane %v80_v18, 1 }
  0x22   :  { %v82_v21 = vadd.f32 %v81_v19, %v80_v18 }
  0x24   :  { %v83_v22 = vadd.f32 %v82_v21, %v73_v20 }
  0x26   :  { %84 = vst [vmem:[#allocation2] sm:$0x1] %v83_v22 }
  0x2d   :  { %v88_v23 = vld [vmem:[#allocation2] sm:$0x1] }
  0x2e   :  { %v90_v24 = vsel %vm89_vm1, %v88_v23, 0.0 }
  0x2f   :  { %91 = vadd.xlane.f32.xlu0 %v90_v24 }
  0xa2   :  { %v92_v25 = vpop.xlane.xlu0 %91 }
  0xa3   :  { %v93_v26 = vrot.slane %v92_v25, 4 }
  0xa5   :  { %v94_v27 = vadd.f32 %v93_v26, %v92_v25 }
  0xa7   :  { %v95_v28 = vrot.slane %v94_v27, 2 }
  0xa9   :  { %v96_v29 = vadd.f32 %v95_v28, %v94_v27 }
  0xab   :  { %v97_v30 = vrot.slane %v96_v29, 1 }
  0xad   :  { %v98_v31 = vadd.f32 %v97_v30, %v96_v29 }
  0xaf   :  { %121 = vpush %v98_v31 }
  0xe0   :  { %s122_s24 = spop %121 }
  0xe1   :  { %v100_v32 = vstv %s122_s24 }
  0xe2   :  { %102 = vst.msk [vmem:[#allocation8] sm:$0x1] %vm101_vm2, %v100_v32 }
  0xe3   :  { %113 = dma.vmem_to_hbm [thread:$0]  %s109_s1, 16, %s111_s23, [#allocation5]  }
  0xe4   :  { %205 = dma.done.wait [#allocation5], 16  }
  0xe5   :  { %206 = vsyncadd [#allocation5], 4294967280 }
  0xe6   :  { %118 = vsyncpa [#allocation4], 1 }
  0xe7   :  { %119 = vsyncpa [#allocation7], 1 }
  0xe8   :  { %120 = vsyncpa [#allocation5], 1 }

</bundles_post_ra>
